<compile_context>
chip_gen: v7x
topology: tpu7x:2x2x1
jax: 0.10.0
libtpu: 0.0.40
codegen_flags: <defaults>
</compile_context>

<pallas_src>
import jax
import jax.numpy as jnp
from jax import lax
from jax.experimental import pallas as pl
from jax.experimental.pallas import tpu as pltpu

BN_EPS = 1e-5
LANE = 128


def _round_up(n, m):
    return ((n + m - 1) // m) * m


# ---------------------------------------------------------------------------
# Kernel: 3 matmuls (bf16 operands, f32 accumulation) + f32 bias/ReLU epilogues.
# BatchNorm is already folded into the weights/biases by the wrapper.
# x_ref arrives as bf16 with the true (unpadded) feature width.
# ---------------------------------------------------------------------------
def mlp_kernel(x_ref, w1_ref, w2_ref, w3_ref, b_ref, out_ref):
    h1 = w1_ref.shape[1]
    h2 = w2_ref.shape[1]
    co = w3_ref.shape[1]

    # fc1 (+ folded bn1) + relu
    h = jnp.dot(x_ref[...], w1_ref[...], preferred_element_type=jnp.float32)
    h = jnp.maximum(h + b_ref[0:1, :h1], 0.0)

    # fc2 (+ folded bn2) + relu
    h = jnp.dot(h.astype(jnp.bfloat16), w2_ref[...],
                preferred_element_type=jnp.float32)
    h = jnp.maximum(h + b_ref[1:2, :h2], 0.0)

    # fc3 (logits), stored lane-dense as bf16
    out = jnp.dot(h.astype(jnp.bfloat16), w3_ref[...],
                  preferred_element_type=jnp.float32)
    out_ref[...] = (out + b_ref[2:3, :co]).astype(out_ref.dtype)


# ---------------------------------------------------------------------------
# Wrapper-side parameter preparation: BN folding, lane padding, dtype casting.
# ---------------------------------------------------------------------------
def fold_and_pad_params(params):
    w1, b1 = params["w1"], params["b1"]
    w2, b2 = params["w2"], params["b2"]
    w3, b3 = params["w3"], params["b3"]

    s1 = params["g1"] * lax.rsqrt(params["v1"] + BN_EPS)
    s2 = params["g2"] * lax.rsqrt(params["v2"] + BN_EPS)
    w1f = w1 * s1[None, :]
    b1f = (b1 - params["m1"]) * s1 + params["bt1"]
    w2f = w2 * s2[None, :]
    b2f = (b2 - params["m2"]) * s2 + params["bt2"]

    F, H1 = w1.shape
    H2 = w2.shape[1]
    C = w3.shape[1]
    H1p = _round_up(H1, LANE)
    H2p = _round_up(H2, LANE)
    Cp = _round_up(C, LANE)

    # Zero-pad output columns only (padded cols: zero weight, zero bias,
    # relu(0)=0 -> contribute nothing).  K dim of w1 stays at the true F so it
    # matches the unpadded x block.
    w1p = jnp.zeros((F, H1p), jnp.float32).at[:, :H1].set(w1f).astype(jnp.bfloat16)
    w2p = jnp.zeros((H1p, H2p), jnp.float32).at[:H1, :H2].set(w2f).astype(jnp.bfloat16)
    w3p = jnp.zeros((H2p, Cp), jnp.float32).at[:H2, :C].set(w3).astype(jnp.bfloat16)

    pmax = max(H1p, H2p, Cp)
    bpack = jnp.zeros((8, pmax), jnp.float32)          # one dense constant block
    bpack = bpack.at[0, :H1].set(b1f).at[1, :H2].set(b2f).at[2, :C].set(b3)

    return dict(w1=w1p, w2=w2p, w3=w3p, bpack=bpack)


def mlp_forward(x, folded, n_classes, *, batch_tile=512):
    w1, w2, w3, bpack = folded["w1"], folded["w2"], folded["w3"], folded["bpack"]
    F, H1p = w1.shape
    H2p = w2.shape[1]
    Cp = w3.shape[1]
    B = x.shape[0]

    # bf16 activation stream; feature dim left at the true width (no Fp pad).
    x_bf16 = x.astype(jnp.bfloat16)
    Bp = _round_up(B, batch_tile)
    if Bp != B:
        # Row-only pad for the ragged last tile (zero rows -> harmless logits,
        # sliced off below).  Skipped entirely on the common aligned path.
        x_bf16 = jnp.pad(x_bf16, ((0, Bp - B), (0, 0)))

    out = pl.pallas_call(
        mlp_kernel,
        out_shape=jax.ShapeDtypeStruct((Bp, Cp), jnp.bfloat16),
        grid_spec=pltpu.PrefetchScalarGridSpec(
            num_scalar_prefetch=0,
            grid=(Bp // batch_tile,),
            in_specs=[
                pl.BlockSpec((batch_tile, F), lambda i: (i, 0)),
                pl.BlockSpec((F, H1p), lambda i: (0, 0)),
                pl.BlockSpec((H1p, H2p), lambda i: (0, 0)),
                pl.BlockSpec((H2p, Cp), lambda i: (0, 0)),
                pl.BlockSpec(bpack.shape, lambda i: (0, 0)),
            ],
            out_specs=pl.BlockSpec((batch_tile, Cp), lambda i: (i, 0)),
        ),
        compiler_params=pltpu.CompilerParams(
            dimension_semantics=("parallel",)),
    )(x_bf16, w1, w2, w3, bpack)

    # Tiny real slice; cast back to f32 outside the kernel.
    return out[:B, :n_classes].astype(jnp.float32)


# ---------------------------------------------------------------------------
# Parameter init (PyTorch nn.Linear / nn.BatchNorm1d style) and references.
# ---------------------------------------------------------------------------
def init_params(key, n_features, n_classes):
    h1 = n_features // 2
    h2 = n_features // 4
    ks = jax.random.split(key, 10)

    def linear(kw, kb, fan_in, fan_out):
        bound = 1.0 / jnp.sqrt(jnp.float32(fan_in))
        w = jax.random.uniform(kw, (fan_in, fan_out), jnp.float32, -bound, bound)
        b = jax.random.uniform(kb, (fan_out,), jnp.float32, -bound, bound)
        return w, b

    w1, b1 = linear(ks[0], ks[1], n_features, h1)
    w2, b2 = linear(ks[2], ks[3], h1, h2)
    w3, b3 = linear(ks[4], ks[5], h2, n_classes)

    def bn(kg, kb, dim):
        # torch defaults are gamma=1, beta=0, mean=0, var=1; perturb so the
        # BN-folding path is actually exercised.
        g = 1.0 + 0.1 * jax.random.normal(kg, (dim,), jnp.float32)
        bt = 0.1 * jax.random.normal(kb, (dim,), jnp.float32)
        m = 0.05 * jax.random.normal(jax.random.fold_in(kb, 1), (dim,), jnp.float32)
        v = 1.0 + 0.1 * jax.random.uniform(jax.random.fold_in(kg, 1), (dim,), jnp.float32)
        return g, bt, m, v

    g1, bt1, m1, v1 = bn(ks[6], ks[7], h1)
    g2, bt2, m2, v2 = bn(ks[8], ks[9], h2)

    return dict(w1=w1, b1=b1, g1=g1, bt1=bt1, m1=m1, v1=v1,
                w2=w2, b2=b2, g2=g2, bt2=bt2, m2=m2, v2=v2,
                w3=w3, b3=b3)


def reference_forward_f32(x, p):
    """Unfolded f32 reference: exactly the PyTorch eval()-mode forward."""
    h = x @ p["w1"] + p["b1"]
    h = (h - p["m1"]) * (p["g1"] / jnp.sqrt(p["v1"] + BN_EPS)) + p["bt1"]
    h = jnp.maximum(h, 0.0)
    h = h @ p["w2"] + p["b2"]
    h = (h - p["m2"]) * (p["g2"] / jnp.sqrt(p["v2"] + BN_EPS)) + p["bt2"]
    h = jnp.maximum(h, 0.0)
    return h @ p["w3"] + p["b3"]


def reference_forward_folded(x, folded, n_classes):
    """Same math as the kernel: folded BN, bf16 operands, f32 accum, bf16 out."""
    H1p = folded["w1"].shape[1]
    H2p = folded["w2"].shape[1]
    Cp = folded["w3"].shape[1]
    xb = x.astype(jnp.bfloat16)
    h = jnp.dot(xb, folded["w1"],
                preferred_element_type=jnp.float32) + folded["bpack"][0:1, :H1p]
    h = jnp.maximum(h, 0.0)
    h = jnp.dot(h.astype(jnp.bfloat16), folded["w2"],
                preferred_element_type=jnp.float32) + folded["bpack"][1:2, :H2p]
    h = jnp.maximum(h, 0.0)
    out = jnp.dot(h.astype(jnp.bfloat16), folded["w3"],
                  preferred_element_type=jnp.float32) + folded["bpack"][2:3, :Cp]
    return out.astype(jnp.bfloat16)[:, :n_classes].astype(jnp.float32)


# TODO(synk): fit/evaluate/predict-argmax/save_state (training loop, plotting,
# dill I/O) are host-side utilities with no kernel equivalent; only forward()
# is implemented.  (Fusing argmax into the kernel epilogue is a further option
# if only class ids are consumed.)

if __name__ == "__main__":
    n_features = 64
    n_classes = 8
    batch = 1024           # 4 grid steps of 256 rows -> >=2 steps per v7x TC
    batch_tile = 256

    key = jax.random.PRNGKey(0)
    k_x, k_p = jax.random.split(key)
    x = jax.random.normal(k_x, (batch, n_features), jnp.float32)

    params = init_params(k_p, n_features, n_classes)
    folded = fold_and_pad_params(params)

    out = mlp_forward(x, folded, n_classes, batch_tile=batch_tile)
    out = jax.block_until_ready(out)
    assert out.shape == (batch, n_classes)

    # Tight check: same math as the kernel (folded BN, bf16 operands/output).
    ref_exact = reference_forward_folded(x, folded, n_classes)
    assert jnp.allclose(out, ref_exact, atol=2e-2, rtol=2e-2), "mismatch vs folded reference"

    # Loose check: original unfolded f32 forward (bf16 rounding only).
    ref_f32 = reference_forward_f32(x, params)
    assert jnp.allclose(out, ref_f32, atol=1e-1, rtol=1e-1), "mismatch vs f32 reference"

    print("KERNEL_OK")
</pallas_src>

<mosaic_0001>
module attributes {stable_mosaic.version = 11 : i64} {
  func.func @mlp_kernel(%arg0: i32, %arg1: memref<256x64xbf16, #tpu.memory_space<vmem>>, %arg2: memref<64x128xbf16, #tpu.memory_space<vmem>>, %arg3: memref<128x128xbf16, #tpu.memory_space<vmem>>, %arg4: memref<128x128xbf16, #tpu.memory_space<vmem>>, %arg5: memref<8x128xf32, #tpu.memory_space<vmem>>, %arg6: memref<256x128xbf16, #tpu.memory_space<vmem>>) attributes {dimension_semantics = [#tpu.dimension_semantics<parallel>], iteration_bounds = array<i64: 4>, scalar_prefetch = 0 : i64, scratch_operands = 0 : i64, tpu.core_type = #tpu.core_type<tc>, window_params = [{transform_indices = @transform_0, window_bounds = array<i64: 256, 64>}, {pipeline_mode = #tpu.pipeline_mode<synchronous>, transform_indices = @transform_1, window_bounds = array<i64: 64, 128>}, {pipeline_mode = #tpu.pipeline_mode<synchronous>, transform_indices = @transform_2, window_bounds = array<i64: 128, 128>}, {pipeline_mode = #tpu.pipeline_mode<synchronous>, transform_indices = @transform_3, window_bounds = array<i64: 128, 128>}, {pipeline_mode = #tpu.pipeline_mode<synchronous>, transform_indices = @transform_4, window_bounds = array<i64: 8, 128>}, {transform_indices = @transform_5, window_bounds = array<i64: 256, 128>}]} {
    %c0 = arith.constant 0 : index
    %c0_0 = arith.constant 0 : index
    %0 = vector.load %arg1[%c0, %c0_0] : memref<256x64xbf16, #tpu.memory_space<vmem>>, vector<256x64xbf16>
    %c0_1 = arith.constant 0 : index
    %c0_2 = arith.constant 0 : index
    %1 = vector.load %arg2[%c0_1, %c0_2] : memref<64x128xbf16, #tpu.memory_space<vmem>>, vector<64x128xbf16>
    %cst = arith.constant dense<0.000000e+00> : vector<256x128xf32>
    %2 = tpu.matmul %0, %1, %cst {dimension_numbers = #tpu.dot_dimension_numbers<[1], [0], [0], [1], [0, 0, 1, 1], [], []>} : vector<256x64xbf16>, vector<64x128xbf16>, vector<256x128xf32> -> vector<256x128xf32>
    %c0_3 = arith.constant 0 : index
    %c0_4 = arith.constant 0 : index
    %3 = vector.load %arg5[%c0_3, %c0_4] : memref<8x128xf32, #tpu.memory_space<vmem>>, vector<1x128xf32>
    %4 = vector.broadcast %3 : vector<1x128xf32> to vector<256x128xf32>
    %5 = arith.addf %2, %4 : vector<256x128xf32>
    %cst_5 = arith.constant 0.000000e+00 : f32
    %6 = vector.broadcast %cst_5 : f32 to vector<256x128xf32>
    %7 = arith.maximumf %5, %6 : vector<256x128xf32>
    %8 = arith.truncf %7 : vector<256x128xf32> to vector<256x128xbf16>
    %c0_6 = arith.constant 0 : index
    %c0_7 = arith.constant 0 : index
    %9 = vector.load %arg3[%c0_6, %c0_7] : memref<128x128xbf16, #tpu.memory_space<vmem>>, vector<128x128xbf16>
    %cst_8 = arith.constant dense<0.000000e+00> : vector<256x128xf32>
    %10 = tpu.matmul %8, %9, %cst_8 {dimension_numbers = #tpu.dot_dimension_numbers<[1], [0], [0], [1], [0, 0, 1, 1], [], []>} : vector<256x128xbf16>, vector<128x128xbf16>, vector<256x128xf32> -> vector<256x128xf32>
    %c1 = arith.constant 1 : index
    %c0_9 = arith.constant 0 : index
    %11 = vector.load %arg5[%c1, %c0_9] : memref<8x128xf32, #tpu.memory_space<vmem>>, vector<1x128xf32>
    %12 = vector.broadcast %11 : vector<1x128xf32> to vector<256x128xf32>
    %13 = arith.addf %10, %12 : vector<256x128xf32>
    %cst_10 = arith.constant 0.000000e+00 : f32
    %14 = vector.broadcast %cst_10 : f32 to vector<256x128xf32>
    %15 = arith.maximumf %13, %14 : vector<256x128xf32>
    %16 = arith.truncf %15 : vector<256x128xf32> to vector<256x128xbf16>
    %c0_11 = arith.constant 0 : index
    %c0_12 = arith.constant 0 : index
    %17 = vector.load %arg4[%c0_11, %c0_12] : memref<128x128xbf16, #tpu.memory_space<vmem>>, vector<128x128xbf16>
    %cst_13 = arith.constant dense<0.000000e+00> : vector<256x128xf32>
    %18 = tpu.matmul %16, %17, %cst_13 {dimension_numbers = #tpu.dot_dimension_numbers<[1], [0], [0], [1], [0, 0, 1, 1], [], []>} : vector<256x128xbf16>, vector<128x128xbf16>, vector<256x128xf32> -> vector<256x128xf32>
    %c2 = arith.constant 2 : index
    %c0_14 = arith.constant 0 : index
    %19 = vector.load %arg5[%c2, %c0_14] : memref<8x128xf32, #tpu.memory_space<vmem>>, vector<1x128xf32>
    %20 = vector.broadcast %19 : vector<1x128xf32> to vector<256x128xf32>
    %21 = arith.addf %18, %20 : vector<256x128xf32>
    %22 = arith.truncf %21 : vector<256x128xf32> to vector<256x128xbf16>
    %c0_15 = arith.constant 0 : index
    %c0_16 = arith.constant 0 : index
    %23 = vector.load %arg6[%c0_15, %c0_16] : memref<256x128xbf16, #tpu.memory_space<vmem>>, vector<256x128xbf16>
    tpu.vector_store %arg6[%c0_15, %c0_16], %22 {strides = array<i32>} : memref<256x128xbf16, #tpu.memory_space<vmem>>, vector<256x128xbf16>,
    return
  }
  func.func @transform_0(%arg0: i32) -> (i32, i32) {
    %c0_i32 = arith.constant 0 : i32
    %c0_i32_0 = arith.constant 0 : i32
    return %arg0, %c0_i32 : i32, i32
  }
  func.func @transform_1(%arg0: i32) -> (i32, i32) {
    %c0_i32 = arith.constant 0 : i32
    %c0_i32_0 = arith.constant 0 : i32
    %c0_i32_1 = arith.constant 0 : i32
    return %c0_i32, %c0_i32_0 : i32, i32
  }
  func.func @transform_2(%arg0: i32) -> (i32, i32) {
    %c0_i32 = arith.constant 0 : i32
    %c0_i32_0 = arith.constant 0 : i32
    %c0_i32_1 = arith.constant 0 : i32
    return %c0_i32, %c0_i32_0 : i32, i32
  }
  func.func @transform_3(%arg0: i32) -> (i32, i32) {
    %c0_i32 = arith.constant 0 : i32
    %c0_i32_0 = arith.constant 0 : i32
    %c0_i32_1 = arith.constant 0 : i32
    return %c0_i32, %c0_i32_0 : i32, i32
  }
  func.func @transform_4(%arg0: i32) -> (i32, i32) {
    %c0_i32 = arith.constant 0 : i32
    %c0_i32_0 = arith.constant 0 : i32
    %c0_i32_1 = arith.constant 0 : i32
    return %c0_i32, %c0_i32_0 : i32, i32
  }
  func.func @transform_5(%arg0: i32) -> (i32, i32) {
    %c0_i32 = arith.constant 0 : i32
    %c0_i32_0 = arith.constant 0 : i32
    return %arg0, %c0_i32 : i32, i32
  }
}

</mosaic_0001>

<bundles_post_ra>
// kernel: tpu_custom_call.1
= control target key start
LH: loop header
LB: loop body
LE: loop exit
PB: predicated region body
PF: predicated region fallthrough
CT: control target
= control target key end

     0   :  { %10 = vsyncpa [#allocation3], 0  ;;  %s2333_s0 = inlined_call_operand.vmem [shape: bf16[1024,64], index: 0, kind: input, shape index: {}]   ;;  %s2334_s1 = inlined_call_operand.vmem [shape: bf16[64,128], index: 1, kind: input, shape index: {}]   ;;  %s2335_s2 = inlined_call_operand.vmem [shape: bf16[128,128], index: 2, kind: input, shape index: {}]   ;;  %s2336_s3 = inlined_call_operand.vmem [shape: bf16[128,128], index: 3, kind: input, shape index: {}]   ;;  %s2337_s4 = inlined_call_operand.vmem [shape: f32[8,128], index: 4, kind: input, shape index: {}]   ;;  %s2338_s5 = inlined_call_operand.hbm [shape: bf16[1024,128], index: 5, kind: output, shape index: {}]  }
   0x1   :  { %12 = vsyncpa [#allocation3 + $0x1], 0  ;;  %s1991_s18 = smov 0   ;;  %s1993_s19 = smov 0  }
   0x2   :  { %s1995_s20 = smov 0   ;;  %s1997_s21 = smov 0  }
   0x3 LB: > { %s2012_s22 = sadd.s32 4294967295, %s1956_s21   ;;  %s1378_s23 = sadd.s32 4294967294, %s1956_s21   ;;  %s1956_s21 = sphi %s1997_s21, %s2344_s21   ;;  %s1952_s20 = sphi %s1995_s20, %s2343_s20   ;;  %s1948_s19 = sphi %s1993_s19, %s2342_s19   ;;  %s1944_s18 = sphi %s1991_s18, %s2341_s18  }
   0x4   : > { %s2016_s24 = sadd.s32 1, %s1956_s21   ;;  %s135_s25 = sadd.s32 1, %s1952_s20 }
   0x5   : > { %s132_s26 = ssub.s32 %s1956_s21, %s2016_s24  ;;  %p145_p0 = scmp.ne.s32.totalorder %s1952_s20, %s1948_s19 }
   0x6   : > { %p133_p1 = scmp.eq.s32.totalorder %s132_s26, 0  ;;  %p146_p2 = scmp.eq.s32.totalorder %s2012_s22, 3 }
   0x7   : > { %p151_p3 = scmp.ne.s32.totalorder %s1948_s19, %s1944_s18  ;;  %p152_p4 = scmp.eq.s32.totalorder %s1378_s23, 3 }
   0x8   : > { %s2027_s27 = scalar_select %p133_p1, %s1952_s20, %s135_s25  }
   0x9   : > { %p2029_p5 = por %p146_p2, %p145_p0  ;;  %p2033_p6 = por %p152_p4, %p151_p3 }
   0xa   : > { %p1381_p7 = scmp.ge.s32.totalorder %s1956_s21, 1  ;;  %p191_p8 = scmp.lt.s32.totalorder %s1956_s21, 5 }
   0xc   : > { %p192_p9 = pnand %p1381_p7, %p191_p8 }
   0xd   : > { %v1858_v0 = vld [vmem:[%s2334_s1] sm:$0xff] (!%p192_p9)   ;;  %s1383_s7 = sshll.u32 (!%p192_p9), %s2012_s22, 5  ;;  %v1859_v1 = vld [vmem:[%s2334_s1 + $0x8] sm:$0xff] (!%p192_p9)   ;;  %v1860_v2 = vld [vmem:[%s2334_s1 + $0x10] sm:$0xff] (!%p192_p9)   ;;  %vm376_vm0 = vcmask (!%p192_p9), 523264   ;;  %s216_s6 = sand.u32 (!%p192_p9), 1, %s1948_s19  }
   0xe   : > { %195 = sbr.rel (%p192_p9) target bundleno = 764 (0x2fc), region = 40  ;;  %p220_p10 = scmp.lt.s32.totalorder (!%p192_p9), %s1383_s7, 127  ;;  %1673 = vmatprep.subr.bf16.mxu0 (!%p192_p9), %v1858_v0  ;;  %1809 = vmatprep.subr.bf16.mxu1 (!%p192_p9), %v1858_v0  ;;  %v1861_v4 = vld [vmem:[%s2334_s1 + $0x18] sm:$0xff] (!%p192_p9)   ;;  %v1878_v5 = vld [vmem:[%s2335_s2] sm:$0xff] (!%p192_p9)   ;;  %v1879_v9 = vld [vmem:[%s2335_s2 + $0x8] sm:$0xff] (!%p192_p9)  }
   0xf   : > { %1674 = vmatpush3.bf16.msra.mxu0 (!%p192_p9), %v1858_v0  ;;  %1813 = vmatpush3.bf16.msra.mxu1 (!%p192_p9), %v1858_v0  ;;  %v1880_v12 = vld [vmem:[%s2335_s2 + $0x10] sm:$0xff] (!%p192_p9)   ;;  %v1881_v17 = vld [vmem:[%s2335_s2 + $0x18] sm:$0xff] (!%p192_p9)   ;;  %v1882_v18 = vld [vmem:[%s2335_s2 + $0x20] sm:$0xff] (!%p192_p9)   ;;  %s1382_s9 = sshll.u32 (!%p192_p9), %s216_s6, 7  ;;  %s1509_s11 = sshll.u32 (!%p192_p9), %s2012_s22, 11 }
  0x10   : > { %1675 = vmatprep.subr.bf16.mxu0 (!%p192_p9), %v1859_v1  ;;  %1810 = vmatprep.subr.bf16.mxu1 (!%p192_p9), %v1859_v1  ;;  %v1883_v23 = vld [vmem:[%s2335_s2 + $0x28] sm:$0xff] (!%p192_p9)   ;;  %v1884_v26 = vld [vmem:[%s2335_s2 + $0x30] sm:$0xff] (!%p192_p9)   ;;  %v1885_v27 = vld [vmem:[%s2335_s2 + $0x38] sm:$0xff] (!%p192_p9)   ;;  %s2235_s10 = scalar_lea.vmem (!%p192_p9), [#allocation2], %s1382_s9  ;;  %s2284_s16 = scalar_lea.hbm (!%p192_p9), %s2338_s5, %s1509_s11 }
  0x11   : > { %v1886_v28 = vld [vmem:[%s2336_s3] sm:$0xff] (!%p192_p9)   ;;  %v1887_v29 = vld [vmem:[%s2336_s3 + $0x8] sm:$0xff] (!%p192_p9)   ;;  %v1888_v30 = vld [vmem:[%s2336_s3 + $0x10] sm:$0xff] (!%p192_p9)   ;;  %s2292_s22 = scalar_lea.sflag (!%p192_p9), [#allocation3], %s216_s6  ;;  %s1958_s23 = smov (!%p192_p9), [#allocation2]  }
  0x12   : > { %v1889_v31 = vld [vmem:[%s2336_s3 + $0x18] sm:$0xff] (!%p192_p9)   ;;  %v1890_v32 = vld [vmem:[%s2336_s3 + $0x20] sm:$0xff] (!%p192_p9)   ;;  %v1891_v33 = vld [vmem:[%s2336_s3 + $0x28] sm:$0xff] (!%p192_p9)   ;;  %s1898_s25 = sshll.u32 (!%p192_p9), %s1958_s23, 4  ;;  %s1899_s25 = int_to_ptr.vmem [resolvable:$false] %s1898_s25 }
  0x13   : > { %1676 = vmatpush3.bf16.msra.mxu0 (!%p192_p9), %v1859_v1  ;;  %1814 = vmatpush3.bf16.msra.mxu1 (!%p192_p9), %v1859_v1  ;;  %v2134_v34 = vld [vmem:[%s2337_s4] ss:$0 sm:$0xff] (!%p192_p9)  ;;  %s1900_s26 = scalar_lea.vmem (!%p192_p9), %s1899_s25, 4096 }
  0x14   : > { %1677 = vmatprep.subr.bf16.mxu0 (!%p192_p9), %v1860_v2  ;;  %1811 = vmatprep.subr.bf16.mxu1 (!%p192_p9), %v1860_v2 }
  0x15   : > { %s2346_s7 = smov (!%p220_p10, %s1383_s7), 127 }
  0x16   : > { %s1384_s12 = sshll.u32 %s2346_s7, 2 }
  0x17   : > { %s2052_s15 = scalar_lea.vmem %s2333_s0, %s1384_s12  ;;  %1678 = vmatpush3.bf16.msra.mxu0 %v1860_v2  ;;  %1815 = vmatpush3.bf16.msra.mxu1 %v1860_v2  ;;  %s1316_s12 = sshll.u32 %s2235_s10, 4  ;;  %s2286_s12 = int_to_ptr.vmem [resolvable:$true] %s1316_s12 }
  0x18   : > { %v1862_v3 = vld [vmem:[%s2052_s15] sm:$0xff]   ;;  %1679 = vmatprep.subr.bf16.mxu0 %v1861_v4  ;;  %1812 = vmatprep.subr.bf16.mxu1 %v1861_v4  ;;  %v1863_v6 = vld [vmem:[%s2052_s15 + $0x8] sm:$0xff]   ;;  %v1864_v7 = vld [vmem:[%s2052_s15 + $0x10] sm:$0xff]   ;;  %s1894_s17 = scalar_lea.vmem %s2286_s12, 2048  ;;  %p1901_p0 = scmp.lt.s32.totalorder %s2286_s12, %s1899_s25 }
  0x19   : > { %1681 = vmatprep.mubr.msk.bf16.mxu0 %vm376_vm0, %v1862_v3  ;;  %v1870_v8 = vld [vmem:[%s2052_s15 + $0x40] sm:$0xff]   ;;  %v1871_v10 = vld [vmem:[%s2052_s15 + $0x48] sm:$0xff]   ;;  %v1872_v11 = vld [vmem:[%s2052_s15 + $0x50] sm:$0xff]   ;;  %p1895_p11 = scmp.ne.s32.totalorder %s2286_s12, %s1894_s17  ;;  %p1902_p1 = scmp.lt.s32.totalorder %s1900_s26, %s1894_s17 }
  0x1a   : > { %1697 = vmatprep.mubr.msk.bf16.mxu1 %vm376_vm0, %v1870_v8  ;;  %v1865_v13 = vld [vmem:[%s2052_s15 + $0x18] sm:$0xff]   ;;  %v1866_v14 = vld [vmem:[%s2052_s15 + $0x20] sm:$0xff]   ;;  %v1867_v19 = vld [vmem:[%s2052_s15 + $0x28] sm:$0xff]  }
  0x1b   : > { %1680 = vmatpush3.bf16.msra.mxu0 %v1861_v4  ;;  %1816 = vmatpush3.bf16.msra.mxu1 %v1861_v4  ;;  %v1873_v15 = vld [vmem:[%s2052_s15 + $0x58] sm:$0xff]   ;;  %v1874_v16 = vld [vmem:[%s2052_s15 + $0x60] sm:$0xff]   ;;  %v1875_v20 = vld [vmem:[%s2052_s15 + $0x68] sm:$0xff]   ;;  %p1896_p12 = pnand %p1895_p11, %p2029_p5  ;;  %p1903_p2 = por %p1902_p1, %p1901_p0 }
  0x1c   : > { %1713 = vmatprep.subr.bf16.mxu1 %v1878_v5  ;;  %v1868_v21 = vld [vmem:[%s2052_s15 + $0x30] sm:$0xff]   ;;  %v1869_v24 = vld [vmem:[%s2052_s15 + $0x38] sm:$0xff]   ;;  %1761 = vmatprep.subr.bf16.mxu0 %v1886_v28 }
  0x1d   : > { %v1876_v22 = vld [vmem:[%s2052_s15 + $0x70] sm:$0xff]   ;;  %v1877_v25 = vld [vmem:[%s2052_s15 + $0x78] sm:$0xff]   ;;  %p1897_p13 = pneg %p1896_p12 }
  0x1e   : > { %1682 = vmatmul.mubr.msk.bf16.vlgmr.msra.gmra.mrb[0].mxu0 %vm376_vm0, %v1863_v6  ;;  %1698 = vmatmul.mubr.msk.bf16.vlgmr.msra.gmra.mrb[0].mxu1 %vm376_vm0, %v1871_v10 }
  0x1f   : > { %1685 = vmatprep.mubr.msk.bf16.mxu0 %vm376_vm0, %v1864_v7  ;;  %1701 = vmatprep.mubr.msk.bf16.mxu1 %vm376_vm0, %v1872_v11  ;;  %p1904_p3 = pnand %p1903_p2, %p1897_p13 }
  0x20   : > { %1714 = vmatpush3.bf16.msra.mxu1 %v1878_v5  ;;  %1762 = vmatpush3.bf16.msra.mxu0 %v1886_v28 }
  0x21   : > { %1715 = vmatprep.subr.bf16.mxu1 %v1879_v9  ;;  %1763 = vmatprep.subr.bf16.mxu0 %v1887_v29 }
  0x24   : > { %1716 = vmatpush3.bf16.msra.mxu1 %v1879_v9  ;;  %1764 = vmatpush3.bf16.msra.mxu0 %v1887_v29 }
  0x25   : > { %1717 = vmatprep.subr.bf16.mxu1 %v1880_v12  ;;  %1765 = vmatprep.subr.bf16.mxu0 %v1888_v30 }
  0x26   : > { %1686 = vmatmul.mubr.msk.bf16.gmra.mrb[4].mxu0 %vm376_vm0, %v1865_v13  ;;  %1702 = vmatmul.mubr.msk.bf16.gmra.mrb[4].mxu1 %vm376_vm0, %v1873_v15 }
  0x27   : > { %1689 = vmatprep.mubr.msk.bf16.mxu0 %vm376_vm0, %v1866_v14  ;;  %1705 = vmatprep.mubr.msk.bf16.mxu1 %vm376_vm0, %v1874_v16 }
  0x28   : > { %1718 = vmatpush3.bf16.msra.mxu1 %v1880_v12  ;;  %1766 = vmatpush3.bf16.msra.mxu0 %v1888_v30 }
  0x29   : > { %1719 = vmatprep.subr.bf16.mxu1 %v1881_v17  ;;  %1767 = vmatprep.subr.bf16.mxu0 %v1889_v31 }
  0x2c   : > { %1720 = vmatpush3.bf16.msra.mxu1 %v1881_v17  ;;  %1768 = vmatpush3.bf16.msra.mxu0 %v1889_v31 }
  0x2d   : > { %1721 = vmatprep.subr.bf16.mxu1 %v1882_v18  ;;  %1769 = vmatprep.subr.bf16.mxu0 %v1890_v32 }
  0x2e   : > { %1690 = vmatmul.mubr.msk.bf16.gmra.mrb[8].mxu0 %vm376_vm0, %v1867_v19  ;;  %1706 = vmatmul.mubr.msk.bf16.gmra.mrb[8].mxu1 %vm376_vm0, %v1875_v20 }
  0x2f   : > { %1693 = vmatprep.mubr.msk.bf16.mxu0 %vm376_vm0, %v1868_v21  ;;  %1709 = vmatprep.mubr.msk.bf16.mxu1 %vm376_vm0, %v1876_v22 }
  0x30   : > { %1722 = vmatpush3.bf16.msra.mxu1 %v1882_v18  ;;  %1770 = vmatpush3.bf16.msra.mxu0 %v1890_v32 }
  0x31   : > { %1723 = vmatprep.subr.bf16.mxu1 %v1883_v23  ;;  %1771 = vmatprep.subr.bf16.mxu0 %v1891_v33 }
  0x34   : > { %1724 = vmatpush3.bf16.msra.mxu1 %v1883_v23  ;;  %1772 = vmatpush3.bf16.msra.mxu0 %v1891_v33 }
  0x35   : > { %1725 = vmatprep.subr.bf16.mxu1 %v1884_v26 }
  0x36   : > { %1694 = vmatmul.mubr.msk.bf16.gmra.mrb[12].mxu0 %vm376_vm0, %v1869_v24  ;;  %1710 = vmatmul.mubr.msk.bf16.gmra.mrb[12].mxu1 %vm376_vm0, %v1877_v25 }
  0x38   : > { %1726 = vmatpush3.bf16.msra.mxu1 %v1884_v26 }
  0x39   : > { %1727 = vmatprep.subr.bf16.mxu1 %v1885_v27 }
  0x3c   : > { %1728 = vmatpush3.bf16.msra.mxu1 %v1885_v27 }
  0xf1   : > { %v1683_v35 = vpop.f32.mrb[0].mxu0  ;;  %v1699_v36 = vpop.f32.mrb[0].mxu1 }
  0xf2   : > { %v468_v37 = vadd.f32 %v1683_v35, %v2134_v34  ;;  %v459_v38 = vpop.f32.mrb[1].mxu0  ;;  %v532_v39 = vadd.f32 %v1699_v36, %v2134_v34  ;;  %v523_v40 = vpop.f32.mrb[1].mxu1 }
  0xf3   : > { %v460_v41 = vadd.f32 %v2134_v34, %v459_v38  ;;  %v1684_v42 = vpop.f32.mrb[2].mxu0  ;;  %v524_v43 = vadd.f32 %v2134_v34, %v523_v40  ;;  %v1700_v44 = vpop.f32.mrb[2].mxu1 }
  0xf4   : > { %v471_v45 = vadd.f32 %v1684_v42, %v2134_v34  ;;  %v462_v46 = vpop.f32.mrb[3].mxu0  ;;  %v604_v47 = vmax.f32 %v532_v39, 0.0  ;;  %v535_v48 = vadd.f32 %v1700_v44, %v2134_v34  ;;  %v526_v49 = vpop.f32.mrb[3].mxu1  ;;  %v588_v53 = vmax.f32 %v468_v37, 0.0 }
  0xf5   : > { %v463_v50 = vadd.f32 %v2134_v34, %v462_v46  ;;  %v602_v51 = vmax.f32 %v524_v43, 0.0  ;;  %v527_v52 = vadd.f32 %v2134_v34, %v526_v49  ;;  %v586_v56 = vmax.f32 %v460_v41, 0.0 }
  0xf6   : > { %v589_v54 = vmax.f32 %v471_v45, 0.0  ;;  %v605_v55 = vmax.f32 %v535_v48, 0.0 }
  0xf7   : > { %v587_v57 = vmax.f32 %v463_v50, 0.0  ;;  %v603_v58 = vmax.f32 %v527_v52, 0.0 }
  0xf8   : > { %v619_v59 = vpack.c.bf16 %v589_v54, %v588_v53  ;;  %v2144_v60 = vpack.c.bf16 %v605_v55, %v604_v47 }
  0xf9   : > { %v618_v61 = vpack.c.bf16 %v587_v57, %v586_v56  ;;  %v1687_v62 = vpop.f32.mrb[4].mxu0  ;;  %v2146_v63 = vpack.c.bf16 %v603_v58, %v602_v51  ;;  %v1703_v0 = vpop.f32.mrb[4].mxu1 }
  0xfa   : > { %v484_v1 = vadd.f32 %v1687_v62, %v2134_v34  ;;  %v475_v2 = vpop.f32.mrb[5].mxu0  ;;  %v548_v3 = vadd.f32 %v1703_v0, %v2134_v34  ;;  %v539_v4 = vpop.f32.mrb[5].mxu1 }
  0xfb   : > { %v476_v5 = vadd.f32 %v2134_v34, %v475_v2  ;;  %v1688_v6 = vpop.f32.mrb[6].mxu0  ;;  %1729 = vmatprep.mubr.bf16.mxu1 %v618_v61  ;;  %v540_v7 = vadd.f32 %v2134_v34, %v539_v4  ;;  %v1704_v8 = vpop.f32.mrb[6].mxu1 }
  0xfc   : > { %v487_v9 = vadd.f32 %v1688_v6, %v2134_v34  ;;  %v478_v10 = vpop.f32.mrb[7].mxu0  ;;  %1730 = vmatmul.mubr.bf16.vlgmr.msra.gmra.mrb[16].mxu1 %v619_v59  ;;  %v608_v11 = vmax.f32 %v548_v3, 0.0  ;;  %v551_v12 = vadd.f32 %v1704_v8, %v2134_v34  ;;  %v542_v13 = vpop.f32.mrb[7].mxu1  ;;  %v592_v17 = vmax.f32 %v484_v1, 0.0 }
  0xfd   : > { %v479_v14 = vadd.f32 %v2134_v34, %v478_v10  ;;  %v606_v15 = vmax.f32 %v540_v7, 0.0  ;;  %v543_v16 = vadd.f32 %v2134_v34, %v542_v13  ;;  %v590_v20 = vmax.f32 %v476_v5, 0.0 }
  0xfe   : > { %v593_v18 = vmax.f32 %v487_v9, 0.0  ;;  %v609_v19 = vmax.f32 %v551_v12, 0.0 }
  0xff   : > { %v591_v21 = vmax.f32 %v479_v14, 0.0  ;;  %v607_v22 = vmax.f32 %v543_v16, 0.0 }
 0x100   : > { %v621_v23 = vpack.c.bf16 %v593_v18, %v592_v17  ;;  %v2156_v24 = vpack.c.bf16 %v609_v19, %v608_v11 }
 0x101   : > { %v620_v25 = vpack.c.bf16 %v591_v21, %v590_v20  ;;  %v1691_v26 = vpop.f32.mrb[8].mxu0  ;;  %v2158_v27 = vpack.c.bf16 %v607_v22, %v606_v15  ;;  %v1707_v28 = vpop.f32.mrb[8].mxu1 }
 0x102   : > { %v500_v29 = vadd.f32 %v1691_v26, %v2134_v34  ;;  %v491_v30 = vpop.f32.mrb[9].mxu0  ;;  %v564_v31 = vadd.f32 %v1707_v28, %v2134_v34  ;;  %v555_v32 = vpop.f32.mrb[9].mxu1 }
 0x103   : > { %v492_v33 = vadd.f32 %v2134_v34, %v491_v30  ;;  %v1692_v35 = vpop.f32.mrb[10].mxu0  ;;  %1733 = vmatprep.mubr.bf16.mxu1 %v620_v25  ;;  %v556_v36 = vadd.f32 %v2134_v34, %v555_v32  ;;  %v1708_v37 = vpop.f32.mrb[10].mxu1 }
 0x104   : > { %v503_v38 = vadd.f32 %v1692_v35, %v2134_v34  ;;  %v494_v39 = vpop.f32.mrb[11].mxu0  ;;  %1734 = vmatmul.mubr.bf16.gmra.mrb[20].mxu1 %v621_v23  ;;  %v612_v40 = vmax.f32 %v564_v31, 0.0  ;;  %v567_v41 = vadd.f32 %v1708_v37, %v2134_v34  ;;  %v558_v42 = vpop.f32.mrb[11].mxu1  ;;  %v596_v46 = vmax.f32 %v500_v29, 0.0 }
 0x105   : > { %v495_v43 = vadd.f32 %v2134_v34, %v494_v39  ;;  %v610_v44 = vmax.f32 %v556_v36, 0.0  ;;  %v559_v45 = vadd.f32 %v2134_v34, %v558_v42  ;;  %v594_v49 = vmax.f32 %v492_v33, 0.0 }
 0x106   : > { %v597_v47 = vmax.f32 %v503_v38, 0.0  ;;  %v613_v48 = vmax.f32 %v567_v41, 0.0 }
 0x107   : > { %v595_v50 = vmax.f32 %v495_v43, 0.0  ;;  %v611_v51 = vmax.f32 %v559_v45, 0.0 }
 0x108   : > { %v623_v52 = vpack.c.bf16 %v597_v47, %v596_v46  ;;  %v631_v53 = vpack.c.bf16 %v613_v48, %v612_v40 }
 0x109   : > { %v622_v54 = vpack.c.bf16 %v595_v50, %v594_v49  ;;  %v1695_v55 = vpop.f32.mrb[12].mxu0  ;;  %v630_v56 = vpack.c.bf16 %v611_v51, %v610_v44  ;;  %v1711_v57 = vpop.f32.mrb[12].mxu1 }
 0x10a   : > { %v516_v58 = vadd.f32 %v1695_v55, %v2134_v34  ;;  %v507_v59 = vpop.f32.mrb[13].mxu0  ;;  %v580_v61 = vadd.f32 %v1711_v57, %v2134_v34  ;;  %v571_v62 = vpop.f32.mrb[13].mxu1 }
 0x10b   : > { %v508_v0 = vadd.f32 %v2134_v34, %v507_v59  ;;  %v1696_v1 = vpop.f32.mrb[14].mxu0  ;;  %1737 = vmatprep.mubr.bf16.mxu1 %v622_v54  ;;  %v572_v2 = vadd.f32 %v2134_v34, %v571_v62  ;;  %v1712_v3 = vpop.f32.mrb[14].mxu1 }
 0x10c   : > { %v519_v4 = vadd.f32 %v1696_v1, %v2134_v34  ;;  %v510_v5 = vpop.f32.mrb[15].mxu0  ;;  %1738 = vmatmul.mubr.bf16.gmra.mrb[24].mxu1 %v623_v52  ;;  %v616_v6 = vmax.f32 %v580_v61, 0.0  ;;  %v583_v7 = vadd.f32 %v1712_v3, %v2134_v34  ;;  %v574_v8 = vpop.f32.mrb[15].mxu1  ;;  %v600_v12 = vmax.f32 %v516_v58, 0.0 }
 0x10d   : > { %v511_v9 = vadd.f32 %v2134_v34, %v510_v5  ;;  %v614_v10 = vmax.f32 %v572_v2, 0.0  ;;  %v575_v11 = vadd.f32 %v2134_v34, %v574_v8  ;;  %v598_v15 = vmax.f32 %v508_v0, 0.0  ;;  %v1892_v34 = vld [vmem:[%s2336_s3 + $0x30] sm:$0xff]  }
 0x10e   : > { %v601_v13 = vmax.f32 %v519_v4, 0.0  ;;  %v617_v14 = vmax.f32 %v583_v7, 0.0  ;;  %1773 = vmatprep.subr.bf16.mxu0 %v1892_v34 }
 0x10f   : > { %v599_v16 = vmax.f32 %v511_v9, 0.0  ;;  %v615_v17 = vmax.f32 %v575_v11, 0.0  ;;  %1774 = vmatpush3.bf16.msra.mxu0 %v1892_v34 }
 0x110   : > { %v625_v18 = vpack.c.bf16 %v601_v13, %v600_v12  ;;  %v633_v19 = vpack.c.bf16 %v617_v14, %v616_v6 }
 0x111   : > { %v624_v20 = vpack.c.bf16 %v599_v16, %v598_v15  ;;  %v632_v21 = vpack.c.bf16 %v615_v17, %v614_v10 }
 0x113   : > { %1741 = vmatprep.mubr.bf16.mxu1 %v624_v20 }
 0x114   : > { %1742 = vmatmul.mubr.bf16.gmra.mrb[28].mxu1 %v625_v18 }
 0x115   : > { %1745 = vmatprep.mubr.bf16.mxu1 %v2146_v63  ;;  %v1893_v63 = vld [vmem:[%s2336_s3 + $0x38] sm:$0xff]  }
 0x116   : > { %1775 = vmatprep.subr.bf16.mxu0 %v1893_v63 }
 0x117   : > { %1776 = vmatpush3.bf16.msra.mxu0 %v1893_v63 }
 0x11c   : > { %1746 = vmatmul.mubr.bf16.gmra.mrb[32].mxu1 %v2144_v60  ;;  %v2189_v60 = vld [vmem:[%s2337_s4 + $0x1] ss:$0 sm:$0xff] }
 0x11d   : > { %1749 = vmatprep.mubr.bf16.mxu1 %v2158_v27 }
 0x124   : > { %1750 = vmatmul.mubr.bf16.gmra.mrb[36].mxu1 %v2156_v24 }
 0x125   : > { %1753 = vmatprep.mubr.bf16.mxu1 %v630_v56 }
 0x12c   : > { %1754 = vmatmul.mubr.bf16.gmra.mrb[40].mxu1 %v631_v53 }
 0x12d   : > { %1757 = vmatprep.mubr.bf16.mxu1 %v632_v21 }
 0x134   : > { %1758 = vmatmul.mubr.bf16.gmra.mrb[44].mxu1 %v633_v19 }
 0x1cf   : > { %v1731_v22 = vpop.f32.mrb[16].mxu1 }
 0x1d0   : > { %v746_v23 = vadd.f32 %v1731_v22, %v2189_v60  ;;  %v737_v24 = vpop.f32.mrb[17].mxu1 }
 0x1d1   : > { %v738_v25 = vadd.f32 %v2189_v60, %v737_v24  ;;  %v1732_v26 = vpop.f32.mrb[18].mxu1 }
 0x1d2   : > { %v749_v27 = vadd.f32 %v1732_v26, %v2189_v60  ;;  %v740_v28 = vpop.f32.mrb[19].mxu1  ;;  %v866_v30 = vmax.f32 %v746_v23, 0.0 }
 0x1d3   : > { %v741_v29 = vadd.f32 %v2189_v60, %v740_v28  ;;  %v864_v32 = vmax.f32 %v738_v25, 0.0 }
 0x1d4   : > { %v867_v31 = vmax.f32 %v749_v27, 0.0 }
 0x1d5   : > { %v865_v33 = vmax.f32 %v741_v29, 0.0 }
 0x1d6   : > { %v897_v35 = vpack.c.bf16 %v867_v31, %v866_v30 }
 0x1d7   : > { %v896_v36 = vpack.c.bf16 %v865_v33, %v864_v32  ;;  %v1735_v37 = vpop.f32.mrb[20].mxu1 }
 0x1d8   : > { %v762_v38 = vadd.f32 %v1735_v37, %v2189_v60  ;;  %v753_v39 = vpop.f32.mrb[21].mxu1 }
 0x1d9   : > { %v754_v40 = vadd.f32 %v2189_v60, %v753_v39  ;;  %v1736_v41 = vpop.f32.mrb[22].mxu1  ;;  %1777 = vmatprep.mubr.bf16.mxu0 %v896_v36 }
 0x1da   : > { %v765_v42 = vadd.f32 %v1736_v41, %v2189_v60  ;;  %v756_v43 = vpop.f32.mrb[23].mxu1  ;;  %1778 = vmatmul.mubr.bf16.vlgmr.msra.gmra.mrb[16].mxu0 %v897_v35  ;;  %v870_v45 = vmax.f32 %v762_v38, 0.0 }
 0x1db   : > { %v757_v44 = vadd.f32 %v2189_v60, %v756_v43  ;;  %v868_v47 = vmax.f32 %v754_v40, 0.0 }
 0x1dc   : > { %v871_v46 = vmax.f32 %v765_v42, 0.0 }
 0x1dd   : > { %v869_v48 = vmax.f32 %v757_v44, 0.0 }
 0x1de   : > { %v899_v49 = vpack.c.bf16 %v871_v46, %v870_v45 }
 0x1df   : > { %v898_v50 = vpack.c.bf16 %v869_v48, %v868_v47  ;;  %v1739_v51 = vpop.f32.mrb[24].mxu1 }
 0x1e0   : > { %v778_v52 = vadd.f32 %v1739_v51, %v2189_v60  ;;  %v769_v53 = vpop.f32.mrb[25].mxu1 }
 0x1e1   : > { %v770_v54 = vadd.f32 %v2189_v60, %v769_v53  ;;  %v1740_v55 = vpop.f32.mrb[26].mxu1  ;;  %1781 = vmatprep.mubr.bf16.mxu0 %v898_v50 }
 0x1e2   : > { %v781_v56 = vadd.f32 %v1740_v55, %v2189_v60  ;;  %v772_v57 = vpop.f32.mrb[27].mxu1  ;;  %1782 = vmatmul.mubr.bf16.gmra.mrb[20].mxu0 %v899_v49  ;;  %v874_v59 = vmax.f32 %v778_v52, 0.0 }
 0x1e3   : > { %v773_v58 = vadd.f32 %v2189_v60, %v772_v57  ;;  %v872_v62 = vmax.f32 %v770_v54, 0.0 }
 0x1e4   : > { %v875_v61 = vmax.f32 %v781_v56, 0.0 }
 0x1e5   : > { %v873_v0 = vmax.f32 %v773_v58, 0.0 }
 0x1e6   : > { %v901_v1 = vpack.c.bf16 %v875_v61, %v874_v59 }
 0x1e7   : > { %v900_v2 = vpack.c.bf16 %v873_v0, %v872_v62  ;;  %v1743_v3 = vpop.f32.mrb[28].mxu1 }
 0x1e8   : > { %v794_v4 = vadd.f32 %v1743_v3, %v2189_v60  ;;  %v785_v5 = vpop.f32.mrb[29].mxu1 }
 0x1e9   : > { %v786_v6 = vadd.f32 %v2189_v60, %v785_v5  ;;  %v1744_v7 = vpop.f32.mrb[30].mxu1  ;;  %1785 = vmatprep.mubr.bf16.mxu0 %v900_v2 }
 0x1ea   : > { %v797_v8 = vadd.f32 %v1744_v7, %v2189_v60  ;;  %v788_v9 = vpop.f32.mrb[31].mxu1  ;;  %1786 = vmatmul.mubr.bf16.gmra.mrb[24].mxu0 %v901_v1  ;;  %v878_v11 = vmax.f32 %v794_v4, 0.0 }
 0x1eb   : > { %v789_v10 = vadd.f32 %v2189_v60, %v788_v9  ;;  %v876_v13 = vmax.f32 %v786_v6, 0.0 }
 0x1ec   : > { %v879_v12 = vmax.f32 %v797_v8, 0.0 }
 0x1ed   : > { %v877_v14 = vmax.f32 %v789_v10, 0.0 }
 0x1ee   : > { %v903_v15 = vpack.c.bf16 %v879_v12, %v878_v11  ;;  %v2227_v11 = vld [vmem:[%s2337_s4 + $0x2] ss:$0 sm:$0xff] }
 0x1ef   : > { %v902_v16 = vpack.c.bf16 %v877_v14, %v876_v13  ;;  %v1747_v17 = vpop.f32.mrb[32].mxu1 }
 0x1f0   : > { %v810_v18 = vadd.f32 %v1747_v17, %v2189_v60  ;;  %v801_v19 = vpop.f32.mrb[33].mxu1 }
 0x1f1   : > { %v802_v20 = vadd.f32 %v2189_v60, %v801_v19  ;;  %v1748_v21 = vpop.f32.mrb[34].mxu1  ;;  %1789 = vmatprep.mubr.bf16.mxu0 %v902_v16 }
 0x1f2   : > { %v813_v34 = vadd.f32 %v1748_v21, %v2189_v60  ;;  %v804_v63 = vpop.f32.mrb[35].mxu1  ;;  %1790 = vmatmul.mubr.bf16.gmra.mrb[28].mxu0 %v903_v15  ;;  %v882_v23 = vmax.f32 %v810_v18, 0.0 }
 0x1f3   : > { %v805_v22 = vadd.f32 %v2189_v60, %v804_v63  ;;  %v880_v25 = vmax.f32 %v802_v20, 0.0 }
 0x1f4   : > { %v883_v24 = vmax.f32 %v813_v34, 0.0 }
 0x1f5   : > { %v881_v26 = vmax.f32 %v805_v22, 0.0 }
 0x1f6   : > { %v905_v27 = vpack.c.bf16 %v883_v24, %v882_v23 }
 0x1f7   : > { %v904_v28 = vpack.c.bf16 %v881_v26, %v880_v25  ;;  %v1751_v29 = vpop.f32.mrb[36].mxu1 }
 0x1f8   : > { %v826_v30 = vadd.f32 %v1751_v29, %v2189_v60  ;;  %v817_v31 = vpop.f32.mrb[37].mxu1 }
 0x1f9   : > { %v818_v32 = vadd.f32 %v2189_v60, %v817_v31  ;;  %v1752_v33 = vpop.f32.mrb[38].mxu1  ;;  %1793 = vmatprep.mubr.bf16.mxu0 %v904_v28 }
 0x1fa   : > { %v829_v35 = vadd.f32 %v1752_v33, %v2189_v60  ;;  %v820_v36 = vpop.f32.mrb[39].mxu1  ;;  %1794 = vmatmul.mubr.bf16.gmra.mrb[32].mxu0 %v905_v27  ;;  %v886_v38 = vmax.f32 %v826_v30, 0.0 }
 0x1fb   : > { %v821_v37 = vadd.f32 %v2189_v60, %v820_v36  ;;  %v884_v40 = vmax.f32 %v818_v32, 0.0 }
 0x1fc   : > { %v887_v39 = vmax.f32 %v829_v35, 0.0 }
 0x1fd   : > { %v885_v41 = vmax.f32 %v821_v37, 0.0 }
 0x1fe   : > { %v907_v42 = vpack.c.bf16 %v887_v39, %v886_v38 }
 0x1ff   : > { %v906_v43 = vpack.c.bf16 %v885_v41, %v884_v40  ;;  %v1755_v44 = vpop.f32.mrb[40].mxu1 }
 0x200   : > { %v842_v45 = vadd.f32 %v1755_v44, %v2189_v60  ;;  %v833_v46 = vpop.f32.mrb[41].mxu1 }
 0x201   : > { %v834_v47 = vadd.f32 %v2189_v60, %v833_v46  ;;  %v1756_v48 = vpop.f32.mrb[42].mxu1  ;;  %1797 = vmatprep.mubr.bf16.mxu0 %v906_v43 }
 0x202   : > { %v845_v49 = vadd.f32 %v1756_v48, %v2189_v60  ;;  %v836_v50 = vpop.f32.mrb[43].mxu1  ;;  %1798 = vmatmul.mubr.bf16.gmra.mrb[36].mxu0 %v907_v42  ;;  %v890_v52 = vmax.f32 %v842_v45, 0.0 }
 0x203   : > { %v837_v51 = vadd.f32 %v2189_v60, %v836_v50  ;;  %v888_v54 = vmax.f32 %v834_v47, 0.0 }
 0x204   : > { %v891_v53 = vmax.f32 %v845_v49, 0.0 }
 0x205   : > { %v889_v55 = vmax.f32 %v837_v51, 0.0 }
 0x206   : > { %v909_v56 = vpack.c.bf16 %v891_v53, %v890_v52 }
 0x207   : > { %v908_v57 = vpack.c.bf16 %v889_v55, %v888_v54  ;;  %v1759_v58 = vpop.f32.mrb[44].mxu1 }
 0x208   : > { %v858_v59 = vadd.f32 %v1759_v58, %v2189_v60  ;;  %v849_v61 = vpop.f32.mrb[45].mxu1 }
 0x209   : > { %v850_v62 = vadd.f32 %v2189_v60, %v849_v61  ;;  %v1760_v0 = vpop.f32.mrb[46].mxu1  ;;  %1801 = vmatprep.mubr.bf16.mxu0 %v908_v57 }
 0x20a   : > { %v861_v1 = vadd.f32 %v1760_v0, %v2189_v60  ;;  %v852_v2 = vpop.f32.mrb[47].mxu1  ;;  %1802 = vmatmul.mubr.bf16.gmra.mrb[40].mxu0 %v909_v56  ;;  %v894_v4 = vmax.f32 %v858_v59, 0.0 }
 0x20b   : > { %v853_v3 = vadd.f32 %v2189_v60, %v852_v2  ;;  %v892_v6 = vmax.f32 %v850_v62, 0.0 }
 0x20c   : > { %v895_v5 = vmax.f32 %v861_v1, 0.0 }
 0x20d   : > { %v893_v7 = vmax.f32 %v853_v3, 0.0 }
 0x20e   : > { %v911_v8 = vpack.c.bf16 %v895_v5, %v894_v4 }
 0x20f   : > { %v910_v9 = vpack.c.bf16 %v893_v7, %v892_v6 }
 0x211   : > { %1805 = vmatprep.mubr.bf16.mxu0 %v910_v9 }
 0x212   : > { %1806 = vmatmul.mubr.bf16.gmra.mrb[44].mxu0 %v911_v8 }
 0x2ad   : > { %v1779_v10 = vpop.f32.mrb[16].mxu0 }
 0x2ae   : > { %v1015_v12 = vpop.f32.mrb[17].mxu0  ;;  %v1024_v60 = vadd.f32 %v1779_v10, %v2227_v11 }
 0x2af   : > { %v1780_v13 = vpop.f32.mrb[18].mxu0  ;;  %v1016_v16 = vadd.f32 %v2227_v11, %v1015_v12 }
 0x2b0   : > { %v1027_v14 = vadd.f32 %v1780_v13, %v2227_v11  ;;  %v1018_v15 = vpop.f32.mrb[19].mxu0 }
 0x2b1   : > { %v1019_v17 = vadd.f32 %v2227_v11, %v1018_v15 }
 0x2b2   : > { %v1518_v18 = vpack.c.bf16 %v1027_v14, %v1024_v60 }
 0x2b3   : > { %v1513_v19 = vpack.c.bf16 %v1019_v17, %v1016_v16 }
 0x2b4   : > { %1590 = vst [vmem:[%s2235_s10 + $0x8] sm:$0xff] %v1518_v18  }
 0x2b5   : > { %1514 = vst [vmem:[%s2235_s10] sm:$0xff] %v1513_v19   ;;  %v1783_v20 = vpop.f32.mrb[20].mxu0 }
 0x2b6   : > { %v1031_v21 = vpop.f32.mrb[21].mxu0  ;;  %v1040_v63 = vadd.f32 %v1783_v20, %v2227_v11 }
 0x2b7   : > { %v1784_v34 = vpop.f32.mrb[22].mxu0  ;;  %v1032_v24 = vadd.f32 %v2227_v11, %v1031_v21 }
 0x2b8   : > { %v1043_v22 = vadd.f32 %v1784_v34, %v2227_v11  ;;  %v1034_v23 = vpop.f32.mrb[23].mxu0 }
 0x2b9   : > { %v1035_v25 = vadd.f32 %v2227_v11, %v1034_v23 }
 0x2ba   : > { %v1528_v26 = vpack.c.bf16 %v1043_v22, %v1040_v63 }
 0x2bb   : > { %v1523_v27 = vpack.c.bf16 %v1035_v25, %v1032_v24 }
 0x2bc   : > { %1592 = vst [vmem:[%s2235_s10 + $0x18] sm:$0xff] %v1528_v26  }
 0x2bd   : > { %1591 = vst [vmem:[%s2235_s10 + $0x10] sm:$0xff] %v1523_v27   ;;  %v1787_v28 = vpop.f32.mrb[24].mxu0 }
 0x2be   : > { %v1047_v29 = vpop.f32.mrb[25].mxu0  ;;  %v1056_v31 = vadd.f32 %v1787_v28, %v2227_v11 }
 0x2bf   : > { %v1788_v30 = vpop.f32.mrb[26].mxu0  ;;  %v1048_v35 = vadd.f32 %v2227_v11, %v1047_v29 }
 0x2c0   : > { %v1059_v32 = vadd.f32 %v1788_v30, %v2227_v11  ;;  %v1050_v33 = vpop.f32.mrb[27].mxu0 }
 0x2c1   : > { %v1051_v36 = vadd.f32 %v2227_v11, %v1050_v33 }
 0x2c2   : > { %v1538_v37 = vpack.c.bf16 %v1059_v32, %v1056_v31 }
 0x2c3   : > { %v1533_v38 = vpack.c.bf16 %v1051_v36, %v1048_v35 }
 0x2c4   : > { %1594 = vst [vmem:[%s2235_s10 + $0x28] sm:$0xff] %v1538_v37  }
 0x2c5   : > { %1593 = vst [vmem:[%s2235_s10 + $0x20] sm:$0xff] %v1533_v38   ;;  %v1791_v39 = vpop.f32.mrb[28].mxu0 }
 0x2c6   : > { %v1063_v40 = vpop.f32.mrb[29].mxu0  ;;  %v1072_v42 = vadd.f32 %v1791_v39, %v2227_v11 }
 0x2c7   : > { %v1792_v41 = vpop.f32.mrb[30].mxu0  ;;  %v1064_v45 = vadd.f32 %v2227_v11, %v1063_v40 }
 0x2c8   : > { %v1075_v43 = vadd.f32 %v1792_v41, %v2227_v11  ;;  %v1066_v44 = vpop.f32.mrb[31].mxu0 }
 0x2c9   : > { %v1067_v46 = vadd.f32 %v2227_v11, %v1066_v44 }
 0x2ca   : > { %v1548_v47 = vpack.c.bf16 %v1075_v43, %v1072_v42 }
 0x2cb   : > { %v1543_v48 = vpack.c.bf16 %v1067_v46, %v1064_v45 }
 0x2cc   : > { %1596 = vst [vmem:[%s2235_s10 + $0x38] sm:$0xff] %v1548_v47  }
 0x2cd   : > { %1595 = vst [vmem:[%s2235_s10 + $0x30] sm:$0xff] %v1543_v48   ;;  %v1795_v49 = vpop.f32.mrb[32].mxu0 }
 0x2ce   : > { %v1079_v50 = vpop.f32.mrb[33].mxu0  ;;  %v1088_v52 = vadd.f32 %v1795_v49, %v2227_v11 }
 0x2cf   : > { %v1796_v51 = vpop.f32.mrb[34].mxu0  ;;  %v1080_v55 = vadd.f32 %v2227_v11, %v1079_v50 }
 0x2d0   : > { %v1091_v53 = vadd.f32 %v1796_v51, %v2227_v11  ;;  %v1082_v54 = vpop.f32.mrb[35].mxu0 }
 0x2d1   : > { %v1083_v56 = vadd.f32 %v2227_v11, %v1082_v54 }
 0x2d2   : > { %v1558_v57 = vpack.c.bf16 %v1091_v53, %v1088_v52 }
 0x2d3   : > { %v1553_v58 = vpack.c.bf16 %v1083_v56, %v1080_v55 }
 0x2d4   : > { %1598 = vst [vmem:[%s2235_s10 + $0x48] sm:$0xff] %v1558_v57  }
 0x2d5   : > { %1597 = vst [vmem:[%s2235_s10 + $0x40] sm:$0xff] %v1553_v58   ;;  %v1799_v59 = vpop.f32.mrb[36].mxu0 }
 0x2d6   : > { %v1095_v61 = vpop.f32.mrb[37].mxu0  ;;  %v1104_v0 = vadd.f32 %v1799_v59, %v2227_v11 }
 0x2d7   : > { %v1800_v62 = vpop.f32.mrb[38].mxu0  ;;  %v1096_v3 = vadd.f32 %v2227_v11, %v1095_v61 }
 0x2d8   : > { %v1107_v1 = vadd.f32 %v1800_v62, %v2227_v11  ;;  %v1098_v2 = vpop.f32.mrb[39].mxu0 }
 0x2d9   : > { %v1099_v4 = vadd.f32 %v2227_v11, %v1098_v2 }
 0x2da   : > { %v1568_v5 = vpack.c.bf16 %v1107_v1, %v1104_v0 }
 0x2db   : > { %v1563_v6 = vpack.c.bf16 %v1099_v4, %v1096_v3 }
 0x2dc   : > { %1600 = vst [vmem:[%s2235_s10 + $0x58] sm:$0xff] %v1568_v5  }
 0x2dd   : > { %1599 = vst [vmem:[%s2235_s10 + $0x50] sm:$0xff] %v1563_v6   ;;  %v1803_v7 = vpop.f32.mrb[40].mxu0 }
 0x2de   : > { %v1111_v8 = vpop.f32.mrb[41].mxu0  ;;  %v1120_v10 = vadd.f32 %v1803_v7, %v2227_v11 }
 0x2df   : > { %v1804_v9 = vpop.f32.mrb[42].mxu0  ;;  %v1112_v60 = vadd.f32 %v2227_v11, %v1111_v8 }
 0x2e0   : > { %v1123_v12 = vadd.f32 %v1804_v9, %v2227_v11  ;;  %v1114_v13 = vpop.f32.mrb[43].mxu0 }
 0x2e1   : > { %v1115_v14 = vadd.f32 %v2227_v11, %v1114_v13 }
 0x2e2   : > { %v1578_v15 = vpack.c.bf16 %v1123_v12, %v1120_v10 }
 0x2e3   : > { %v1573_v16 = vpack.c.bf16 %v1115_v14, %v1112_v60 }
 0x2e4   : > { %1602 = vst [vmem:[%s2235_s10 + $0x68] sm:$0xff] %v1578_v15  }
 0x2e5   : > { %1601 = vst [vmem:[%s2235_s10 + $0x60] sm:$0xff] %v1573_v16   ;;  %v1807_v17 = vpop.f32.mrb[44].mxu0 }
 0x2e6   : > { %v1127_v18 = vpop.f32.mrb[45].mxu0  ;;  %v1136_v20 = vadd.f32 %v1807_v17, %v2227_v11 }
 0x2e7   : > { %v1808_v19 = vpop.f32.mrb[46].mxu0  ;;  %v1128_v63 = vadd.f32 %v2227_v11, %v1127_v18 }
 0x2e8   : > { %v1139_v21 = vadd.f32 %v1808_v19, %v2227_v11  ;;  %v1130_v34 = vpop.f32.mrb[47].mxu0 }
 0x2e9   : > { %v1131_v22 = vadd.f32 %v2227_v11, %v1130_v34 }
 0x2ea   : > { %v1588_v23 = vpack.c.bf16 %v1139_v21, %v1136_v20 }
 0x2eb   : > { %v1583_v24 = vpack.c.bf16 %v1131_v22, %v1128_v63 }
 0x2ec   : > { %1604 = vst [vmem:[%s2235_s10 + $0x78] sm:$0xff] %v1588_v23  }
 0x2ed   : > { %1603 = vst [vmem:[%s2235_s10 + $0x70] sm:$0xff] %v1583_v24  }
 0x2ee   : > { %1907 = shalt.err (!%p1904_p3)
}
 0x2ef   : > { %s1908_s15 = scalar_lea.hbm %s2284_s16, 2048  ;;  %s1912_s7 = scalar_lea.hbm %s2338_s5, 8192 }
 0x2f0   : > { %p1909_p4 = scmp.ne.s32.totalorder %s2284_s16, %s1908_s15  ;;  %p1913_p9 = scmp.lt.u32.totalorder %s2284_s16, %s2338_s5 }
 0x2f1   : > { %p1914_p10 = scmp.lt.u32.totalorder %s1912_s7, %s1908_s15  ;;  %p1916_p12 = scmp.lt.u32.totalorder %s1908_s15, %s2284_s16 }
 0x2f2   : > { %p1910_p7 = pnand %p1909_p4, %p2029_p5 }
 0x2f3   : > { %p1915_p11 = por %p1914_p10, %p1913_p9 }
 0x2f4   : > { %p1911_p8 = pneg %p1910_p7 }
 0x2f5   : > { %p1917_p13 = por %p1916_p12, %p1915_p11 }
 0x2f7   : > { %p1918_p0 = pnand %p1917_p13, %p1911_p8 }
 0x2f9   : > { %1921 = shalt.err (!%p1918_p0)
}
 0x2fa   : > { %s1959_s10 = smov 64   ;;  %s1960_s11 = smov 4  }
 0x2fb   : > { %1817 = dma.vmem_to_hbm [thread:$0]  (%p2029_p5), %s2286_s12, 2048, %s2284_s16, %s2292_s22, %s1959_s10, %s1959_s10, %s1960_s11  }
 0x2fc PF: > { %p1823_p1 = scmp.ge.s32.totalorder %s1956_s21, 2  ;;  %s1331_s13 = sand.u32 1, %s1944_s18  }
 0x2fd   : > { %s1332_s14 = scalar_lea.sflag [#allocation3], %s1331_s13 }
 0x2fe   : > { %p1820_p2 = pnand %p1823_p1, %p2033_p6 }
 0x300   : > { %1939 = dma.done.wait (!%p1820_p2), %s1332_s14, 2048  }
 0x301   : > { %1941 = vsyncadd (!%p1820_p2), %s1332_s14, 4294965248  ;;  %p15_p3 = scmp.ge.s32.totalorder %s2016_s24, 6   ;;  %s2341_s18 = smov %s1948_s19 }
 0x302   : > { %s2342_s19 = smov %s1952_s20  ;;  %s2343_s20 = smov %s2027_s27 }
 0x303   : > { %s2344_s21 = smov %s2016_s24  ;;  %17 = sbr.rel (!%p15_p3) target bundleno = 3 (0x3), region = 75 }
 0x30a   :  { %1337 = vsyncpa [#allocation3], 1 }
 0x30b   :  { %1339 = vsyncpa [#allocation3 + $0x1], 1 }

</bundles_post_ra>
